<compile_context>
chip_gen: v5e
topology: v5e:2x2
jax: 0.10.0
libtpu: 0.0.40
codegen_flags: <defaults>
</compile_context>

<pallas_src>
import math

import jax
import jax.numpy as jnp
from jax.experimental import pallas as pl
from jax.experimental.pallas import tpu as pltpu


def _round_up(a: int, b: int) -> int:
    return (a + b - 1) // b * b


def _make_ncc_stats_kernel(t_rows: int, rows_total: int, n_half: int,
                           need_mask: bool):
    """Builds the per-(sample, split, row-tile) partial-sum kernel."""
    n_groups = t_rows // 8
    unroll = max(1, min(8, n_groups))

    def kernel(x_ref, y_ref, o_ref):
        # x_ref / y_ref : (1, t_rows, 128) lane-dense input tiles.
        # o_ref         : (1, 1, 5, 8, 128) resident accumulator for this
        #                 (sample, split): [sum x, sum y, sum xx, sum yy, sum xy].
        m = pl.program_id(2)

        @pl.when(m == 0)
        def _init():
            o_ref[...] = jnp.zeros_like(o_ref)

        def partial_sums(masked: bool, base_row):
            # One pass over the tile: 2 vreg loads + ~8 VALU ops per (8,128)
            # group, five (8,128) partials carried in vregs.
            def body(g, carry):
                sx, sy, sxx, syy, sxy = carry
                r0 = pl.multiple_of(g * 8, 8)
                x = x_ref[0, pl.ds(r0, 8), :].astype(jnp.float32)
                y = y_ref[0, pl.ds(r0, 8), :].astype(jnp.float32)
                if masked:
                    rid = base_row + r0 + jax.lax.broadcasted_iota(
                        jnp.int32, (8, 128), 0)
                    ok = rid < rows_total
                    x = jnp.where(ok, x, 0.0)
                    y = jnp.where(ok, y, 0.0)
                return (sx + x, sy + y, sxx + x * x, syy + y * y, sxy + x * y)

            z = jnp.zeros((8, 128), jnp.float32)
            return jax.lax.fori_loop(0, n_groups, body, (z, z, z, z, z),
                                     unroll=unroll)

        def accumulate(sums):
            for k in range(5):
                o_ref[0, 0, k] += sums[k]

        if need_mask:
            m_global = pl.program_id(1) * n_half + m
            base_row = m_global * t_rows
            is_partial = base_row + t_rows > rows_total

            @pl.when(is_partial)
            def _masked_tile():
                accumulate(partial_sums(True, base_row))

            @pl.when(jnp.logical_not(is_partial))
            def _full_tile():
                accumulate(partial_sums(False, 0))
        else:
            accumulate(partial_sums(False, 0))

    return kernel


def ncc_loss(inp, target, *, max_tile_rows: int = 8192):
    """Pallas TPU implementation of NormalizedCrossCorrelationLoss.forward."""
    assert inp.shape == target.shape, "input and target must have the same shape"
    B = inp.shape[0]
    M = math.prod(inp.shape[1:])

    x = inp.reshape(B, M)
    y = target.reshape(B, M)

    # Lane-dense layout: pad the flat feature axis (only when necessary) to the
    # next multiple of 1024 = 8*128 so it reshapes to (rows, 128) full vregs.
    rows = _round_up(pl.cdiv(M, 128), 8)
    m_pad = rows * 128
    if m_pad != M:
        # TODO(synk): fully copy-free ragged path (flat pl.ANY ref + manual DMA)
        # to avoid this one-off jnp.pad read+write when M % 1024 != 0.
        x = jnp.pad(x, ((0, 0), (0, m_pad - M)))
        y = jnp.pad(y, ((0, 0), (0, m_pad - M)))
    x3 = x.reshape(B, rows, 128)
    y3 = y.reshape(B, rows, 128)

    # Tile sizing: pick the tile count first, then round the per-tile row count
    # up to a multiple of 8, so padding waste is < 8 rows per tile (never a
    # near-doubling of read traffic).
    n_tiles = pl.cdiv(rows, max_tile_rows)
    t_rows = _round_up(pl.cdiv(rows, n_tiles), 8)
    n_tiles = pl.cdiv(rows, t_rows)

    # v7x megacore: a second "parallel" axis splits the row-tile range in two so
    # both TensorCores get work even for B == 1.  Harmless on v5e/v6e (1 TC).
    n_split = 2 if n_tiles >= 2 else 1
    n_half = pl.cdiv(n_tiles, n_split)
    need_mask = n_split * n_half * t_rows > rows
    last_tile = n_tiles - 1

    def in_map(b, c, m):
        # Clamp so overhang tiles (from splitting an odd tile count) never issue
        # an out-of-bounds DMA; they are fully masked inside the kernel.
        return (b, jnp.minimum(c * n_half + m, last_tile), 0)

    kernel = _make_ncc_stats_kernel(t_rows, rows, n_half, need_mask)

    itemsize = jnp.dtype(x3.dtype).itemsize
    cost = pl.CostEstimate(
        flops=8 * B * m_pad,
        transcendentals=0,
        bytes_accessed=2 * B * m_pad * itemsize + B * n_split * 5 * 8 * 128 * 4,
    )

    stats = pl.pallas_call(
        kernel,
        out_shape=jax.ShapeDtypeStruct((B, n_split, 5, 8, 128), jnp.float32),
        grid_spec=pl.GridSpec(
            grid=(B, n_split, n_half),
            in_specs=[
                pl.BlockSpec((1, t_rows, 128), in_map),
                pl.BlockSpec((1, t_rows, 128), in_map),
            ],
            out_specs=pl.BlockSpec((1, 1, 5, 8, 128),
                                   lambda b, c, m: (b, c, 0, 0, 0)),
        ),
        compiler_params=pltpu.CompilerParams(
            dimension_semantics=("parallel", "parallel", "arbitrary"),
            # Above the 16 MiB v5e scoped default; 2 inputs x 2 buffers x 4 MiB
            # = 16 MiB of pipelined blocks fit with headroom on every generation
            # (v7x: 64 MiB physical).  On v6e both max_tile_rows and this limit
            # can be raised further (128 MiB physical VMEM).
            vmem_limit_bytes=32 * 1024 * 1024,
        ),
        cost_estimate=cost,
    )(x3, y3)

    # Tiny epilogue: collapse (split, 8, 128) partials, apply NCC with true M.
    s = jnp.sum(stats, axis=(1, 3, 4))                 # (B, 5)
    inv_m = jnp.float32(1.0 / M)
    mean_x = s[:, 0] * inv_m
    mean_y = s[:, 1] * inv_m
    # Clamp: single-pass E[x^2] - E[x]^2 can round slightly negative.
    var_x = jnp.maximum(s[:, 2] * inv_m - mean_x * mean_x, 0.0)
    var_y = jnp.maximum(s[:, 3] * inv_m - mean_y * mean_y, 0.0)
    cov = s[:, 4] * inv_m - mean_x * mean_y
    ncc = cov / (jnp.sqrt(var_x) * jnp.sqrt(var_y))
    return 1.0 - jnp.mean(ncc)


def ncc_loss_ref(inp, target):
    """Pure-JAX transliteration of the PyTorch forward (correctness check)."""
    B = inp.shape[0]
    x = inp.reshape(B, -1)
    y = target.reshape(B, -1)
    xm = x - jnp.mean(x, axis=1, keepdims=True)
    ym = y - jnp.mean(y, axis=1, keepdims=True)
    ncc = (xm * ym).mean(1) / (
        jnp.sqrt((xm ** 2).mean(1)) * jnp.sqrt((ym ** 2).mean(1)))
    return 1.0 - jnp.mean(ncc)


if __name__ == "__main__":
    key = jax.random.PRNGKey(0)
    k1, k2, k3, k4, k5, k6 = jax.random.split(key, 6)

    # Case 1: M = 1024 (single full tile, no padding, no masking, no split).
    inp1 = jax.random.normal(k1, (2, 4, 16, 16), dtype=jnp.float32)
    tgt1 = 0.7 * inp1 + 0.3 * jax.random.normal(k2, (2, 4, 16, 16), jnp.float32)
    out1 = jax.block_until_ready(ncc_loss(inp1, tgt1))
    ref1 = ncc_loss_ref(inp1, tgt1)
    assert jnp.allclose(out1, ref1, rtol=1e-4, atol=1e-5), (float(out1), float(ref1))

    # Case 2: ragged M = 297 (minimal 8x128 pad, zero padding carries the tail).
    inp2 = jax.random.normal(k3, (3, 3, 9, 11), dtype=jnp.float32)
    tgt2 = 0.5 * inp2 + 0.5 * jax.random.normal(k4, (3, 3, 9, 11), jnp.float32)
    out2 = jax.block_until_ready(ncc_loss(inp2, tgt2))
    ref2 = ncc_loss_ref(inp2, tgt2)
    assert jnp.allclose(out2, ref2, rtol=1e-4, atol=1e-5), (float(out2), float(ref2))

    # Case 3: multi-tile reduction + 2-way megacore split with an odd tile
    # count (exercises the masked partial tile and the clamped overhang tile).
    inp3 = jax.random.normal(k5, (2, 8, 24, 24), dtype=jnp.float32)
    tgt3 = 0.6 * inp3 + 0.4 * jax.random.normal(k6, (2, 8, 24, 24), jnp.float32)
    out3 = jax.block_until_ready(ncc_loss(inp3, tgt3, max_tile_rows=16))
    ref3 = ncc_loss_ref(inp3, tgt3)
    assert jnp.allclose(out3, ref3, rtol=1e-4, atol=1e-5), (float(out3), float(ref3))

    print("KERNEL_OK")
</pallas_src>

<mosaic_0001>
module attributes {stable_mosaic.version = 11 : i64} {
  func.func @kernel(%arg0: i32, %arg1: i32, %arg2: i32, %arg3: memref<1x8x128xf32, #tpu.memory_space<vmem>>, %arg4: memref<1x8x128xf32, #tpu.memory_space<vmem>>, %arg5: memref<1x1x5x8x128xf32, #tpu.memory_space<vmem>>) attributes {dimension_semantics = [#tpu.dimension_semantics<parallel>, #tpu.dimension_semantics<parallel>, #tpu.dimension_semantics<arbitrary>], iteration_bounds = array<i64: 2, 1, 1>, scalar_prefetch = 0 : i64, scratch_operands = 0 : i64, tpu.core_type = #tpu.core_type<tc>, window_params = [{transform_indices = @transform_0, window_bounds = array<i64: 1, 8, 128>}, {transform_indices = @transform_1, window_bounds = array<i64: 1, 8, 128>}, {transform_indices = @transform_2, window_bounds = array<i64: 1, 1, 5, 8, 128>}]} {
    %c0_i32 = arith.constant 0 : i32
    %0 = arith.cmpi eq, %arg2, %c0_i32 : i32
    %1 = arith.extui %0 : i1 to i32
    %c0_i32_0 = arith.constant 0 : i32
    %2 = arith.cmpi ne, %1, %c0_i32_0 : i32
    scf.if %2 {
      %cst_51 = arith.constant 0.000000e+00 : f32
      %50 = vector.broadcast %cst_51 : f32 to vector<1x1x5x8x128xf32>
      %c0_52 = arith.constant 0 : index
      %c0_53 = arith.constant 0 : index
      %c0_54 = arith.constant 0 : index
      %c0_55 = arith.constant 0 : index
      %c0_56 = arith.constant 0 : index
      %51 = vector.load %arg5[%c0_52, %c0_53, %c0_54, %c0_55, %c0_56] : memref<1x1x5x8x128xf32, #tpu.memory_space<vmem>>, vector<1x1x5x8x128xf32>
      tpu.vector_store %arg5[%c0_52, %c0_53, %c0_54, %c0_55, %c0_56], %50 {strides = array<i32>} : memref<1x1x5x8x128xf32, #tpu.memory_space<vmem>>, vector<1x1x5x8x128xf32>,
    } else {
    }
    %cst = arith.constant 0.000000e+00 : f32
    %3 = vector.broadcast %cst : f32 to vector<8x128xf32>
    %c0_i32_1 = arith.constant 0 : i32
    %c8_i32 = arith.constant 8 : i32
    %4 = arith.muli %c0_i32_1, %c8_i32 : i32
    %5 = tpu.assume_multiple %4, 8 : i32
    %c0 = arith.constant 0 : index
    %6 = arith.index_cast %5 : i32 to index
    %c0_2 = arith.constant 0 : index
    %7 = vector.load %arg3[%c0, %6, %c0_2] : memref<1x8x128xf32, #tpu.memory_space<vmem>>, vector<1x8x128xf32>
    %8 = vector.shape_cast %7 : vector<1x8x128xf32> to vector<8x128xf32>
    %c0_3 = arith.constant 0 : index
    %9 = arith.index_cast %5 : i32 to index
    %c0_4 = arith.constant 0 : index
    %10 = vector.load %arg4[%c0_3, %9, %c0_4] : memref<1x8x128xf32, #tpu.memory_space<vmem>>, vector<1x8x128xf32>
    %11 = vector.shape_cast %10 : vector<1x8x128xf32> to vector<8x128xf32>
    %12 = arith.addf %3, %8 : vector<8x128xf32>
    %13 = arith.addf %3, %11 : vector<8x128xf32>
    %14 = arith.mulf %8, %8 : vector<8x128xf32>
    %15 = arith.addf %3, %14 : vector<8x128xf32>
    %16 = arith.mulf %11, %11 : vector<8x128xf32>
    %17 = arith.addf %3, %16 : vector<8x128xf32>
    %18 = arith.mulf %8, %11 : vector<8x128xf32>
    %19 = arith.addf %3, %18 : vector<8x128xf32>
    %c1_i32 = arith.constant 1 : i32
    %c0_5 = arith.constant 0 : index
    %c0_6 = arith.constant 0 : index
    %c0_7 = arith.constant 0 : index
    %c0_8 = arith.constant 0 : index
    %c0_9 = arith.constant 0 : index
    %20 = vector.load %arg5[%c0_5, %c0_6, %c0_7, %c0_8, %c0_9] : memref<1x1x5x8x128xf32, #tpu.memory_space<vmem>>, vector<1x1x1x8x128xf32>
    %21 = vector.shape_cast %20 : vector<1x1x1x8x128xf32> to vector<8x128xf32>
    %22 = arith.addf %21, %12 : vector<8x128xf32>
    %c0_10 = arith.constant 0 : index
    %c0_11 = arith.constant 0 : index
    %c0_12 = arith.constant 0 : index
    %c0_13 = arith.constant 0 : index
    %c0_14 = arith.constant 0 : index
    %23 = vector.load %arg5[%c0_10, %c0_11, %c0_12, %c0_13, %c0_14] : memref<1x1x5x8x128xf32, #tpu.memory_space<vmem>>, vector<1x1x1x8x128xf32>
    %24 = vector.shape_cast %23 : vector<1x1x1x8x128xf32> to vector<8x128xf32>
    %25 = vector.shape_cast %22 : vector<8x128xf32> to vector<1x1x1x8x128xf32>
    tpu.vector_store %arg5[%c0_10, %c0_11, %c0_12, %c0_13, %c0_14], %25 {strides = array<i32>} : memref<1x1x5x8x128xf32, #tpu.memory_space<vmem>>, vector<1x1x1x8x128xf32>,
    %c0_15 = arith.constant 0 : index
    %c0_16 = arith.constant 0 : index
    %c1 = arith.constant 1 : index
    %c0_17 = arith.constant 0 : index
    %c0_18 = arith.constant 0 : index
    %26 = vector.load %arg5[%c0_15, %c0_16, %c1, %c0_17, %c0_18] : memref<1x1x5x8x128xf32, #tpu.memory_space<vmem>>, vector<1x1x1x8x128xf32>
    %27 = vector.shape_cast %26 : vector<1x1x1x8x128xf32> to vector<8x128xf32>
    %28 = arith.addf %27, %13 : vector<8x128xf32>
    %c0_19 = arith.constant 0 : index
    %c0_20 = arith.constant 0 : index
    %c1_21 = arith.constant 1 : index
    %c0_22 = arith.constant 0 : index
    %c0_23 = arith.constant 0 : index
    %29 = vector.load %arg5[%c0_19, %c0_20, %c1_21, %c0_22, %c0_23] : memref<1x1x5x8x128xf32, #tpu.memory_space<vmem>>, vector<1x1x1x8x128xf32>
    %30 = vector.shape_cast %29 : vector<1x1x1x8x128xf32> to vector<8x128xf32>
    %31 = vector.shape_cast %28 : vector<8x128xf32> to vector<1x1x1x8x128xf32>
    tpu.vector_store %arg5[%c0_19, %c0_20, %c1_21, %c0_22, %c0_23], %31 {strides = array<i32>} : memref<1x1x5x8x128xf32, #tpu.memory_space<vmem>>, vector<1x1x1x8x128xf32>,
    %c0_24 = arith.constant 0 : index
    %c0_25 = arith.constant 0 : index
    %c2 = arith.constant 2 : index
    %c0_26 = arith.constant 0 : index
    %c0_27 = arith.constant 0 : index
    %32 = vector.load %arg5[%c0_24, %c0_25, %c2, %c0_26, %c0_27] : memref<1x1x5x8x128xf32, #tpu.memory_space<vmem>>, vector<1x1x1x8x128xf32>
    %33 = vector.shape_cast %32 : vector<1x1x1x8x128xf32> to vector<8x128xf32>
    %34 = arith.addf %33, %15 : vector<8x128xf32>
    %c0_28 = arith.constant 0 : index
    %c0_29 = arith.constant 0 : index
    %c2_30 = arith.constant 2 : index
    %c0_31 = arith.constant 0 : index
    %c0_32 = arith.constant 0 : index
    %35 = vector.load %arg5[%c0_28, %c0_29, %c2_30, %c0_31, %c0_32] : memref<1x1x5x8x128xf32, #tpu.memory_space<vmem>>, vector<1x1x1x8x128xf32>
    %36 = vector.shape_cast %35 : vector<1x1x1x8x128xf32> to vector<8x128xf32>
    %37 = vector.shape_cast %34 : vector<8x128xf32> to vector<1x1x1x8x128xf32>
    tpu.vector_store %arg5[%c0_28, %c0_29, %c2_30, %c0_31, %c0_32], %37 {strides = array<i32>} : memref<1x1x5x8x128xf32, #tpu.memory_space<vmem>>, vector<1x1x1x8x128xf32>,
    %c0_33 = arith.constant 0 : index
    %c0_34 = arith.constant 0 : index
    %c3 = arith.constant 3 : index
    %c0_35 = arith.constant 0 : index
    %c0_36 = arith.constant 0 : index
    %38 = vector.load %arg5[%c0_33, %c0_34, %c3, %c0_35, %c0_36] : memref<1x1x5x8x128xf32, #tpu.memory_space<vmem>>, vector<1x1x1x8x128xf32>
    %39 = vector.shape_cast %38 : vector<1x1x1x8x128xf32> to vector<8x128xf32>
    %40 = arith.addf %39, %17 : vector<8x128xf32>
    %c0_37 = arith.constant 0 : index
    %c0_38 = arith.constant 0 : index
    %c3_39 = arith.constant 3 : index
    %c0_40 = arith.constant 0 : index
    %c0_41 = arith.constant 0 : index
    %41 = vector.load %arg5[%c0_37, %c0_38, %c3_39, %c0_40, %c0_41] : memref<1x1x5x8x128xf32, #tpu.memory_space<vmem>>, vector<1x1x1x8x128xf32>
    %42 = vector.shape_cast %41 : vector<1x1x1x8x128xf32> to vector<8x128xf32>
    %43 = vector.shape_cast %40 : vector<8x128xf32> to vector<1x1x1x8x128xf32>
    tpu.vector_store %arg5[%c0_37, %c0_38, %c3_39, %c0_40, %c0_41], %43 {strides = array<i32>} : memref<1x1x5x8x128xf32, #tpu.memory_space<vmem>>, vector<1x1x1x8x128xf32>,
    %c0_42 = arith.constant 0 : index
    %c0_43 = arith.constant 0 : index
    %c4 = arith.constant 4 : index
    %c0_44 = arith.constant 0 : index
    %c0_45 = arith.constant 0 : index
    %44 = vector.load %arg5[%c0_42, %c0_43, %c4, %c0_44, %c0_45] : memref<1x1x5x8x128xf32, #tpu.memory_space<vmem>>, vector<1x1x1x8x128xf32>
    %45 = vector.shape_cast %44 : vector<1x1x1x8x128xf32> to vector<8x128xf32>
    %46 = arith.addf %45, %19 : vector<8x128xf32>
    %c0_46 = arith.constant 0 : index
    %c0_47 = arith.constant 0 : index
    %c4_48 = arith.constant 4 : index
    %c0_49 = arith.constant 0 : index
    %c0_50 = arith.constant 0 : index
    %47 = vector.load %arg5[%c0_46, %c0_47, %c4_48, %c0_49, %c0_50] : memref<1x1x5x8x128xf32, #tpu.memory_space<vmem>>, vector<1x1x1x8x128xf32>
    %48 = vector.shape_cast %47 : vector<1x1x1x8x128xf32> to vector<8x128xf32>
    %49 = vector.shape_cast %46 : vector<8x128xf32> to vector<1x1x1x8x128xf32>
    tpu.vector_store %arg5[%c0_46, %c0_47, %c4_48, %c0_49, %c0_50], %49 {strides = array<i32>} : memref<1x1x5x8x128xf32, #tpu.memory_space<vmem>>, vector<1x1x1x8x128xf32>,
    return
  }
  func.func @transform_0(%arg0: i32, %arg1: i32, %arg2: i32) -> (i32, i32, i32) {
    %c1_i32 = arith.constant 1 : i32
    %0 = arith.muli %arg1, %c1_i32 : i32
    %1 = arith.addi %0, %arg2 : i32
    %c0_i32 = arith.constant 0 : i32
    %2 = arith.minsi %1, %c0_i32 : i32
    %c0_i32_0 = arith.constant 0 : i32
    %c0_i32_1 = arith.constant 0 : i32
    return %arg0, %2, %c0_i32_0 : i32, i32, i32
  }
  func.func @transform_1(%arg0: i32, %arg1: i32, %arg2: i32) -> (i32, i32, i32) {
    %c1_i32 = arith.constant 1 : i32
    %0 = arith.muli %arg1, %c1_i32 : i32
    %1 = arith.addi %0, %arg2 : i32
    %c0_i32 = arith.constant 0 : i32
    %2 = arith.minsi %1, %c0_i32 : i32
    %c0_i32_0 = arith.constant 0 : i32
    %c0_i32_1 = arith.constant 0 : i32
    return %arg0, %2, %c0_i32_0 : i32, i32, i32
  }
  func.func @transform_2(%arg0: i32, %arg1: i32, %arg2: i32) -> (i32, i32, i32, i32, i32) {
    %c0_i32 = arith.constant 0 : i32
    %c0_i32_0 = arith.constant 0 : i32
    %c0_i32_1 = arith.constant 0 : i32
    %c0_i32_2 = arith.constant 0 : i32
    return %arg0, %arg1, %c0_i32, %c0_i32_0, %c0_i32_1 : i32, i32, i32, i32, i32
  }
}

</mosaic_0001>

<bundles_post_ra>
// kernel: tpu_custom_call.1
= control target key start
LH: loop header
LB: loop body
LE: loop exit
PB: predicated region body
PF: predicated region fallthrough
CT: control target
= control target key end

     0   :  { %7 = vsyncpa [#allocation3], 0  ;;  %s807_s0 = inlined_call_operand.hbm [shape: f32[2,8,128], index: 0, kind: input, shape index: {}]   ;;  %s808_s1 = inlined_call_operand.hbm [shape: f32[2,8,128], index: 1, kind: input, shape index: {}]   ;;  %s809_s2 = inlined_call_operand.hbm [shape: f32[2,1,5,8,128], index: 2, kind: output, shape index: {}]  }
   0x1   :  { %9 = vsyncpa [#allocation3 + $0x1], 0 }
   0x2   :  { %10 = vsyncpa [#allocation6], 0 }
   0x3   :  { %12 = vsyncpa [#allocation6 + $0x1], 0 }
   0x4   :  { %13 = vsyncpa [#allocation4], 0 }
   0x5   :  { %15 = vsyncpa [#allocation4 + $0x1], 0  ;;  %s678_s9 = smov 0   ;;  %s680_s10 = smov 0  }
   0x6   :  { %s682_s11 = smov 0   ;;  %s684_s12 = smov 0  }
   0x7   :  { %s686_s13 = smov 0   ;;  %s688_s14 = smov 0  }
   0x8 LB: > { %s419_s15 = sadd.s32 4294967295, %s659_s14   ;;  %s420_s16 = sadd.s32 4294967294, %s659_s14   ;;  %s659_s14 = sphi %s688_s14, %s21_s14   ;;  %s655_s13 = sphi %s686_s13, %s818_s13   ;;  %s651_s12 = sphi %s684_s12, %s817_s12   ;;  %s647_s11 = sphi %s682_s11, %s816_s11   ;;  %s643_s10 = sphi %s680_s10, %s815_s10   ;;  %s639_s9 = sphi %s678_s9, %s814_s9  }
   0x9   : > { %s40_s17 = sadd.s32 1, %s655_s13  ;;  %s55_s18 = sadd.s32 1, %s647_s11 }
   0xa   : > { %p42_p0 = scmp.ge.s32.totalorder %s40_s17, 2  ;;  %p62_p1 = scmp.ne.s32.totalorder %s647_s11, %s643_s10 }
   0xb   : > { %p63_p2 = scmp.eq.s32.totalorder %s659_s14, 0  ;;  %p68_p3 = scmp.ne.s32.totalorder %s643_s10, %s639_s9 }
   0xc   : > { %s820_s17 = smov (%p42_p0, %s40_s17), 0  ;;  %p69_p5 = scmp.eq.s32.totalorder %s419_s15, 0 }
   0xd   : > { %p719_p4 = por %p63_p2, %p62_p1  ;;  %s50_s20 = ssub.s32 %s655_s13, %s820_s17 }
   0xe   : > { %p128_p6 = scmp.eq.s32.totalorder %s419_s15, 1  ;;  %p53_p7 = scmp.eq.s32.totalorder %s50_s20, 0 }
   0xf   : > { %p725_p8 = por %p69_p5, %p68_p3  ;;  %p134_p10 = scmp.eq.s32.totalorder %s420_s16, 1 }
  0x10   : > { %p729_p9 = por %p128_p6, %p62_p1  ;;  %p422_p12 = scmp.ge.s32.totalorder %s659_s14, 2 }
  0x11   : > { %s734_s23 = scalar_select %p53_p7, %s647_s11, %s55_s18  }
  0x12   : > { %p736_p11 = por %p134_p10, %p68_p3  ;;  %p460_p13 = scmp.lt.s32.totalorder %s659_s14, 2 }
  0x13   : > { %s154_s25 = sand.u32 1, %s647_s11   ;;  %s424_s27 = sshll.u32 %s655_s13, 3 }
  0x14   : > { %s423_s26 = sshll.u32 %s154_s25, 3  ;;  %s166_s30 = scalar_lea.hbm %s807_s0, %s424_s27 }
  0x15   : > { %s158_s3 = scalar_lea.vmem [#allocation2], %s423_s26  ;;  %s168_s5 = sshll.u32 %s166_s30, 4  ;;  %s169_s5 = int_to_ptr.hbm [resolvable:$true] %s168_s5 }
  0x16   : > { %s170_s4 = sshll.u32 %s158_s3, 4  ;;  %p450_p0 = pnand %p460_p13, %p719_p4  ;;  %s171_s4 = int_to_ptr.vmem [resolvable:$true] %s170_s4 }
  0x17   : > { %p427_p1 = scmp.ge.s32.totalorder %s659_s14, 1  ;;  %p198_p2 = scmp.lt.s32.totalorder %s659_s14, 3 }
  0x18   : > { %s155_s6 = scalar_lea.sflag [#allocation3], %s154_s25  ;;  %s189_s15 = scalar_lea.hbm %s808_s1, %s424_s27 }
  0x19   : > { %452 = dma.hbm_to_vmem [thread:$0]  (!%p450_p0), %s169_s5, 128, %s171_s4, %s155_s6  }
  0x1a   : > { %p199_p3 = pnand %p427_p1, %p198_p2  ;;  %s181_s16 = scalar_lea.vmem [#allocation5], %s423_s26 }
  0x1b   : > { %s193_s18 = sshll.u32 %s181_s16, 4  ;;  %s191_s20 = sshll.u32 %s189_s15, 4  ;;  %s194_s18 = int_to_ptr.vmem [resolvable:$true] %s193_s18  ;;  %s192_s20 = int_to_ptr.hbm [resolvable:$true] %s191_s20 }
  0x1c   : > { %s178_s28 = scalar_lea.sflag [#allocation6], %s154_s25  ;;  %202 = sbr.rel (%p199_p3) target bundleno = 54 (0x36), region = 28 }
  0x1d   : > { %455 = dma.hbm_to_vmem [thread:$0]  (!%p450_p0), %s192_s20, 128, %s194_s18, %s178_s28  }
  0x1e   : > { %s755_s19 = sand.u32 (!%p199_p3), 1, %s643_s10  }
  0x1f   : > { %s428_s29 = sshll.u32 (!%p199_p3), %s755_s19, 3  ;;  %s205_s30 = scalar_lea.sflag (!%p199_p3), [#allocation3], %s755_s19 }
  0x20   : > { %s208_s3 = scalar_lea.vmem (!%p199_p3), [#allocation2], %s428_s29 }
  0x21   : > { %626 = dma.done.wait (%p725_p8), %s205_s30, 128  }
  0x22   : > { %628 = vsyncadd (%p725_p8), %s205_s30, 4294967168  ;;  %s215_s26 = scalar_lea.sflag [#allocation6], %s755_s19  ;;  %s218_s25 = scalar_lea.vmem [#allocation5], %s428_s29 }
  0x23   : > { %630 = dma.done.wait (%p725_p8), %s215_s26, 128  }
  0x24   : > { %632 = vsyncadd (%p725_p8), %s215_s26, 4294967168  ;;  %s441_s27 = smul.u32 40, %s755_s19  ;;  %v260_v0 = vld [vmem:[%s208_s3] sm:$0xff]  ;;  %v261_v1 = vld [vmem:[%s218_s25] sm:$0xff]  ;;  %s593_s29 = scalar_lea.hbm %s809_s2, 80 }
  0x25   : > { %s442_s4 = smul.u32 40, %s651_s12  ;;  %v264_v2 = vmul.f32 %v260_v0, %v260_v0  ;;  %v266_v3 = vmul.f32 %v261_v1, %v261_v1  ;;  %v268_v4 = vmul.f32 %v261_v1, %v260_v0  ;;  %s290_s12 = scalar_lea.sflag [#allocation4], %s755_s19 }
  0x26   : > { %s244_s8 = scalar_lea.vmem [#allocation7], %s441_s27 }
  0x27   : > { %s303_s7 = scalar_lea.hbm %s809_s2, %s442_s4  ;;  %s304_s15 = sshll.u32 %s244_s8, 4  ;;  %272 = vst [vmem:[%s244_s8] sm:$0xff] %v260_v0  ;;  %s305_s15 = int_to_ptr.vmem [resolvable:$true] %s304_s15 }
  0x28   : > { %s306_s16 = sshll.u32 %s303_s7, 4  ;;  %431 = vst [vmem:[%s244_s8 + $0x8] sm:$0xff] %v261_v1  ;;  %s307_s16 = int_to_ptr.hbm [resolvable:$true] %s306_s16 }
  0x29   : > { %433 = vst [vmem:[%s244_s8 + $0x10] sm:$0xff] %v264_v2  ;;  %s587_s21 = sshra.s32 %s307_s16, 4  ;;  %s588_s21 = int_to_ptr.hbm [resolvable:$true] %s587_s21 }
  0x2a   : > { %435 = vst [vmem:[%s244_s8 + $0x18] sm:$0xff] %v266_v3  ;;  %s589_s18 = scalar_lea.hbm %s588_s21, 40  ;;  %p594_p7 = scmp.lt.s32.totalorder %s588_s21, %s809_s2 }
  0x2b   : > { %437 = vst [vmem:[%s244_s8 + $0x20] sm:$0xff] %v268_v4  ;;  %p590_p4 = scmp.ne.s32.totalorder %s588_s21, %s589_s18  ;;  %p595_p8 = scmp.lt.s32.totalorder %s593_s29, %s589_s18 }
  0x2d   : > { %p591_p5 = pnand %p590_p4, %p729_p9  ;;  %p596_p10 = por %p595_p8, %p594_p7 }
  0x2f   : > { %p592_p6 = pneg %p591_p5 }
  0x31   : > { %p597_p13 = pnand %p596_p10, %p592_p6 }
  0x33   : > { %600 = shalt.err (!%p597_p13)
}
  0x34   : > { %s661_s19 = smov 128   ;;  %s662_s26 = smov 8  }
  0x35   : > { %447 = dma.vmem_to_hbm [thread:$0]  (%p729_p9), %s305_s15, 640, %s307_s16, %s290_s12, %s661_s19, %s661_s19, %s662_s26  }
  0x36 PF: > { %s321_s25 = sand.u32 1, %s639_s9   ;;  %p457_p0 = pnand %p422_p12, %p736_p11 }
  0x37   : > { %s322_s27 = scalar_lea.sflag [#allocation4], %s321_s25 }
  0x38   : > { %p458_p1 = pneg %p457_p0 }
  0x3a   : > { %634 = dma.done.wait (%p458_p1), %s322_s27, 640  }
  0x3b   : > { %636 = vsyncadd (%p458_p1), %s322_s27, 4294966656  ;;  %s21_s14 = sadd.s32 1, %s659_s14   ;;  %s814_s9 = smov %s643_s10 }
  0x3c   : > { %p18_p2 = scmp.ge.s32.totalorder %s21_s14, 4   ;;  %s815_s10 = smov %s647_s11 }
  0x3d   : > { %s816_s11 = smov %s734_s23  ;;  %s817_s12 = smov %s655_s13 }
  0x3e   : > { %s818_s13 = smov %s820_s17  ;;  %20 = sbr.rel (!%p18_p2) target bundleno = 8 (0x8), region = 94 }
  0x43   :  { %328 = vsyncpa [#allocation3], 1 }
  0x44   :  { %330 = vsyncpa [#allocation3 + $0x1], 1 }
  0x45   :  { %331 = vsyncpa [#allocation6], 1 }
  0x46   :  { %333 = vsyncpa [#allocation6 + $0x1], 1 }
  0x47   :  { %334 = vsyncpa [#allocation4], 1 }
  0x48   :  { %336 = vsyncpa [#allocation4 + $0x1], 1 }

</bundles_post_ra>
